<compile_context>
chip_gen: v6e
topology: v6e:2x2x1
jax: 0.10.0
libtpu: 0.0.40
codegen_flags: <defaults>
</compile_context>

<pallas_src>
import jax
import jax.numpy as jnp
from jax import lax
from jax.experimental import pallas as pl
from jax.experimental.pallas import tpu as pltpu

DT = 0.02  # self.dt in the PyTorch module

# Packed (24, 128) parameter buffer (out-features on sublanes, transposed):
#   rows  0: 6, cols 0:3 -> W1^T (6,3),  col 3 -> b1 (6,)
#   rows  8:14, cols 0:6 -> W2^T (6,6),  col 6 -> b2 (6,)
#   rows 16:19, cols 0:6 -> W3^T (3,6),  col 6 -> b3 (3,)
PACK_ROWS, PACK_COLS = 24, 128
L1_R, L2_R, L3_R = 0, 8, 16

BATCH_BLOCK = 128  # lanes (batch samples) per grid step


def rollout_kernel(xa_ref, p_ref, out_ref):
    T = xa_ref.shape[0]
    Bb = out_ref.shape[-1]
    P = p_ref[...]  # (24, 128) f32

    # ---- hoisted, loop-invariant weight / bias lane-broadcasts ------------
    def col(r0, r1, c, n):
        return jnp.broadcast_to(P[r0:r1, c:c + 1], (n, Bb))

    w1 = [col(L1_R, L1_R + 6, k, 6) for k in range(3)]
    b1 = col(L1_R, L1_R + 6, 3, 6)
    w2 = [col(L2_R, L2_R + 6, k, 6) for k in range(6)]
    b2 = col(L2_R, L2_R + 6, 6, 6)
    w3 = [col(L3_R, L3_R + 3, k, 3) for k in range(6)]
    b3 = col(L3_R, L3_R + 3, 6, 3)

    def sub(row, n):  # sublane-broadcast an activation row (1,Bb) -> (n,Bb)
        return jnp.broadcast_to(row, (n, Bb))

    s0 = xa_ref[0][2:8, :]  # state0^T  (6, Bb)

    def step(t, s):
        xa_t = xa_ref[t]                     # (8, Bb); rows 0..1 = action_t^T
        # Layer 1: x = [state[2], a0, a1], K=3
        h = (b1 + sub(s[2:3, :], 6) * w1[0]) + \
            (sub(xa_t[0:1, :], 6) * w1[1] + sub(xa_t[1:2, :], 6) * w1[2])
        h = jnp.maximum(h, 0.0)
        # Layer 2: K=6, balanced-tree accumulation
        p2 = [sub(h[k:k + 1, :], 6) * w2[k] for k in range(6)]
        h2 = ((p2[0] + p2[1]) + (p2[2] + p2[3])) + ((p2[4] + p2[5]) + b2)
        h2 = jnp.maximum(h2, 0.0)
        # Layer 3: K=6, balanced-tree accumulation
        p3 = [sub(h2[k:k + 1, :], 3) * w3[k] for k in range(6)]
        y = ((p3[0] + p3[1]) + (p3[2] + p3[3])) + ((p3[4] + p3[5]) + b3)
        # state_next = state + [dt * vel, y]
        pos, vel = s[0:3, :], s[3:6, :]
        return jnp.concatenate([pos + DT * vel, vel + y], axis=0)

    out_ref[...] = lax.fori_loop(0, T, step, s0, unroll=True)


def dynamics_rollout(state0, actions, packed_params):
    """Fused T-step rollout inside one pallas_call.

    state0: (B, 6); actions: (T, B, 2). Returns the final state (B, 6).
    """
    T, B, _ = actions.shape
    Bp = pl.cdiv(B, BATCH_BLOCK) * BATCH_BLOCK  # pad batch to lane multiple

    # Single packed activation buffer: 2 input DMAs total (xa + params).
    xa = jnp.zeros((T, 8, Bp), jnp.float32)
    xa = xa.at[:, 0:2, :B].set(
        jnp.transpose(actions.astype(jnp.float32), (0, 2, 1)))
    xa = xa.at[0, 2:8, :B].set(state0.astype(jnp.float32).T)

    out = pl.pallas_call(
        rollout_kernel,
        out_shape=jax.ShapeDtypeStruct((6, Bp), jnp.float32),
        grid=(Bp // BATCH_BLOCK,),
        in_specs=[pl.BlockSpec((T, 8, BATCH_BLOCK), lambda i: (0, 0, i)),
                  pl.BlockSpec((PACK_ROWS, PACK_COLS), lambda i: (0, 0))],
        out_specs=pl.BlockSpec((6, BATCH_BLOCK), lambda i: (0, i)),
        compiler_params=pltpu.CompilerParams(
            dimension_semantics=("parallel",)),
    )(xa, packed_params)
    # Production callers should keep the (feature, batch) layout; transpose
    # back only to match the PyTorch (batch, feature) API / reference.
    return out[:, :B].T


def dynamics_forward(state, action, packed_params):
    """Single module-forward step (PyTorch semantics) == T=1 rollout."""
    return dynamics_rollout(state, action[None], packed_params)


def init_params(key):
    """PyTorch-style init: U(-1/sqrt(fan_in), 1/sqrt(fan_in)).

    Weights stored transposed vs nn.Linear, i.e. (in, out); biases (1, out).
    """
    layer_dims = [(3, 6), (6, 6), (6, 3)]
    params = []
    for fan_in, fan_out in layer_dims:
        key, kw, kb = jax.random.split(key, 3)
        bound = 1.0 / float(fan_in) ** 0.5
        w = jax.random.uniform(kw, (fan_in, fan_out), jnp.float32, -bound, bound)
        b = jax.random.uniform(kb, (1, fan_out), jnp.float32, -bound, bound)
        params += [w, b]
    return params


def pack_params(params):
    """Pack all weights/biases, transposed, into one (24, 128) f32 buffer."""
    w1, b1, w2, b2, w3, b3 = params
    P = jnp.zeros((PACK_ROWS, PACK_COLS), jnp.float32)
    P = P.at[L1_R:L1_R + 6, 0:3].set(w1.T)
    P = P.at[L1_R:L1_R + 6, 3].set(b1.reshape(-1))
    P = P.at[L2_R:L2_R + 6, 0:6].set(w2.T)
    P = P.at[L2_R:L2_R + 6, 6].set(b2.reshape(-1))
    P = P.at[L3_R:L3_R + 3, 0:6].set(w3.T)
    P = P.at[L3_R:L3_R + 3, 6].set(b3.reshape(-1))
    return P


def dynamics_forward_ref(state, action, params):
    """Pure-JAX reference (matches the PyTorch forward)."""
    w1, b1, w2, b2, w3, b3 = params
    x = jnp.concatenate([state[:, 2:3], action], axis=1)
    h = jnp.maximum(x @ w1 + b1, 0.0)
    h = jnp.maximum(h @ w2 + b2, 0.0)
    y = h @ w3 + b3
    increment = jnp.concatenate([state[:, 3:] * DT, y], axis=1)
    return state + increment


if __name__ == "__main__":
    key = jax.random.PRNGKey(0)
    key, ks, ka, kr, kp = jax.random.split(key, 5)

    B, T = 8, 8
    state = jax.random.normal(ks, (B, 6), jnp.float32)      # quadrotor state
    action = jax.random.normal(ka, (B, 2), jnp.float32)     # single action
    actions = jax.random.normal(kr, (T, B, 2), jnp.float32)  # MPC action seq

    params = init_params(kp)
    packed = pack_params(params)

    # --- single step: exactly DynamicsModel.forward -------------------------
    out1 = jax.block_until_ready(dynamics_forward(state, action, packed))
    ref1 = dynamics_forward_ref(state, action, params)
    assert out1.shape == (B, 6) and out1.dtype == jnp.float32
    assert jnp.allclose(out1, ref1, atol=1e-5, rtol=1e-5)

    # --- fused T-step rollout: one pallas_call for all T steps --------------
    out2 = jax.block_until_ready(dynamics_rollout(state, actions, packed))
    ref2 = state
    for t in range(T):
        ref2 = dynamics_forward_ref(ref2, actions[t], params)
    assert jnp.allclose(out2, ref2, atol=1e-4, rtol=1e-4)

    print("KERNEL_OK")
</pallas_src>

<mosaic_0001>
module attributes {stable_mosaic.version = 11 : i64} {
  func.func @rollout_kernel(%arg0: i32, %arg1: memref<1x8x128xf32, #tpu.memory_space<vmem>>, %arg2: memref<24x128xf32, #tpu.memory_space<vmem>>, %arg3: memref<6x128xf32, #tpu.memory_space<vmem>>) attributes {dimension_semantics = [#tpu.dimension_semantics<parallel>], iteration_bounds = array<i64: 1>, scalar_prefetch = 0 : i64, scratch_operands = 0 : i64, tpu.core_type = #tpu.core_type<tc>, window_params = [{transform_indices = @transform_0, window_bounds = array<i64: 1, 8, 128>}, {pipeline_mode = #tpu.pipeline_mode<synchronous>, transform_indices = @transform_1, window_bounds = array<i64: 24, 128>}, {transform_indices = @transform_2, window_bounds = array<i64: 6, 128>}]} {
    %c0 = arith.constant 0 : index
    %c0_0 = arith.constant 0 : index
    %0 = vector.load %arg2[%c0, %c0_0] : memref<24x128xf32, #tpu.memory_space<vmem>>, vector<24x128xf32>
    %1 = vector.extract_strided_slice %0 {offsets = [0, 0], sizes = [6, 1], strides = [1, 1]} : vector<24x128xf32> to vector<6x1xf32>
    %2 = vector.shape_cast %1 : vector<6x1xf32> to vector<6x1xf32>
    %3 = vector.broadcast %2 : vector<6x1xf32> to vector<6x128xf32>
    %4 = vector.extract_strided_slice %0 {offsets = [0, 1], sizes = [6, 1], strides = [1, 1]} : vector<24x128xf32> to vector<6x1xf32>
    %5 = vector.shape_cast %4 : vector<6x1xf32> to vector<6x1xf32>
    %6 = vector.broadcast %5 : vector<6x1xf32> to vector<6x128xf32>
    %7 = vector.extract_strided_slice %0 {offsets = [0, 2], sizes = [6, 1], strides = [1, 1]} : vector<24x128xf32> to vector<6x1xf32>
    %8 = vector.shape_cast %7 : vector<6x1xf32> to vector<6x1xf32>
    %9 = vector.broadcast %8 : vector<6x1xf32> to vector<6x128xf32>
    %10 = vector.extract_strided_slice %0 {offsets = [0, 3], sizes = [6, 1], strides = [1, 1]} : vector<24x128xf32> to vector<6x1xf32>
    %11 = vector.shape_cast %10 : vector<6x1xf32> to vector<6x1xf32>
    %12 = vector.broadcast %11 : vector<6x1xf32> to vector<6x128xf32>
    %13 = vector.extract_strided_slice %0 {offsets = [8, 0], sizes = [6, 1], strides = [1, 1]} : vector<24x128xf32> to vector<6x1xf32>
    %14 = vector.shape_cast %13 : vector<6x1xf32> to vector<6x1xf32>
    %15 = vector.broadcast %14 : vector<6x1xf32> to vector<6x128xf32>
    %16 = vector.extract_strided_slice %0 {offsets = [8, 1], sizes = [6, 1], strides = [1, 1]} : vector<24x128xf32> to vector<6x1xf32>
    %17 = vector.shape_cast %16 : vector<6x1xf32> to vector<6x1xf32>
    %18 = vector.broadcast %17 : vector<6x1xf32> to vector<6x128xf32>
    %19 = vector.extract_strided_slice %0 {offsets = [8, 2], sizes = [6, 1], strides = [1, 1]} : vector<24x128xf32> to vector<6x1xf32>
    %20 = vector.shape_cast %19 : vector<6x1xf32> to vector<6x1xf32>
    %21 = vector.broadcast %20 : vector<6x1xf32> to vector<6x128xf32>
    %22 = vector.extract_strided_slice %0 {offsets = [8, 3], sizes = [6, 1], strides = [1, 1]} : vector<24x128xf32> to vector<6x1xf32>
    %23 = vector.shape_cast %22 : vector<6x1xf32> to vector<6x1xf32>
    %24 = vector.broadcast %23 : vector<6x1xf32> to vector<6x128xf32>
    %25 = vector.extract_strided_slice %0 {offsets = [8, 4], sizes = [6, 1], strides = [1, 1]} : vector<24x128xf32> to vector<6x1xf32>
    %26 = vector.shape_cast %25 : vector<6x1xf32> to vector<6x1xf32>
    %27 = vector.broadcast %26 : vector<6x1xf32> to vector<6x128xf32>
    %28 = vector.extract_strided_slice %0 {offsets = [8, 5], sizes = [6, 1], strides = [1, 1]} : vector<24x128xf32> to vector<6x1xf32>
    %29 = vector.shape_cast %28 : vector<6x1xf32> to vector<6x1xf32>
    %30 = vector.broadcast %29 : vector<6x1xf32> to vector<6x128xf32>
    %31 = vector.extract_strided_slice %0 {offsets = [8, 6], sizes = [6, 1], strides = [1, 1]} : vector<24x128xf32> to vector<6x1xf32>
    %32 = vector.shape_cast %31 : vector<6x1xf32> to vector<6x1xf32>
    %33 = vector.broadcast %32 : vector<6x1xf32> to vector<6x128xf32>
    %34 = vector.extract_strided_slice %0 {offsets = [16, 0], sizes = [3, 1], strides = [1, 1]} : vector<24x128xf32> to vector<3x1xf32>
    %35 = vector.shape_cast %34 : vector<3x1xf32> to vector<3x1xf32>
    %36 = vector.broadcast %35 : vector<3x1xf32> to vector<3x128xf32>
    %37 = vector.extract_strided_slice %0 {offsets = [16, 1], sizes = [3, 1], strides = [1, 1]} : vector<24x128xf32> to vector<3x1xf32>
    %38 = vector.shape_cast %37 : vector<3x1xf32> to vector<3x1xf32>
    %39 = vector.broadcast %38 : vector<3x1xf32> to vector<3x128xf32>
    %40 = vector.extract_strided_slice %0 {offsets = [16, 2], sizes = [3, 1], strides = [1, 1]} : vector<24x128xf32> to vector<3x1xf32>
    %41 = vector.shape_cast %40 : vector<3x1xf32> to vector<3x1xf32>
    %42 = vector.broadcast %41 : vector<3x1xf32> to vector<3x128xf32>
    %43 = vector.extract_strided_slice %0 {offsets = [16, 3], sizes = [3, 1], strides = [1, 1]} : vector<24x128xf32> to vector<3x1xf32>
    %44 = vector.shape_cast %43 : vector<3x1xf32> to vector<3x1xf32>
    %45 = vector.broadcast %44 : vector<3x1xf32> to vector<3x128xf32>
    %46 = vector.extract_strided_slice %0 {offsets = [16, 4], sizes = [3, 1], strides = [1, 1]} : vector<24x128xf32> to vector<3x1xf32>
    %47 = vector.shape_cast %46 : vector<3x1xf32> to vector<3x1xf32>
    %48 = vector.broadcast %47 : vector<3x1xf32> to vector<3x128xf32>
    %49 = vector.extract_strided_slice %0 {offsets = [16, 5], sizes = [3, 1], strides = [1, 1]} : vector<24x128xf32> to vector<3x1xf32>
    %50 = vector.shape_cast %49 : vector<3x1xf32> to vector<3x1xf32>
    %51 = vector.broadcast %50 : vector<3x1xf32> to vector<3x128xf32>
    %52 = vector.extract_strided_slice %0 {offsets = [16, 6], sizes = [3, 1], strides = [1, 1]} : vector<24x128xf32> to vector<3x1xf32>
    %53 = vector.shape_cast %52 : vector<3x1xf32> to vector<3x1xf32>
    %54 = vector.broadcast %53 : vector<3x1xf32> to vector<3x128xf32>
    %c0_1 = arith.constant 0 : index
    %c0_2 = arith.constant 0 : index
    %c0_3 = arith.constant 0 : index
    %55 = vector.load %arg1[%c0_1, %c0_2, %c0_3] : memref<1x8x128xf32, #tpu.memory_space<vmem>>, vector<1x8x128xf32>
    %56 = vector.shape_cast %55 : vector<1x8x128xf32> to vector<8x128xf32>
    %57 = vector.extract_strided_slice %56 {offsets = [2, 0], sizes = [6, 128], strides = [1, 1]} : vector<8x128xf32> to vector<6x128xf32>
    %c0_i32 = arith.constant 0 : i32
    %58 = arith.index_cast %c0_i32 : i32 to index
    %c0_4 = arith.constant 0 : index
    %c0_5 = arith.constant 0 : index
    %59 = vector.load %arg1[%58, %c0_4, %c0_5] : memref<1x8x128xf32, #tpu.memory_space<vmem>>, vector<1x8x128xf32>
    %60 = vector.shape_cast %59 : vector<1x8x128xf32> to vector<8x128xf32>
    %61 = vector.extract_strided_slice %57 {offsets = [2, 0], sizes = [1, 128], strides = [1, 1]} : vector<6x128xf32> to vector<1x128xf32>
    %62 = vector.shape_cast %61 : vector<1x128xf32> to vector<1x128xf32>
    %63 = vector.broadcast %62 : vector<1x128xf32> to vector<6x128xf32>
    %64 = arith.mulf %63, %3 : vector<6x128xf32>
    %65 = arith.addf %12, %64 : vector<6x128xf32>
    %66 = vector.extract_strided_slice %60 {offsets = [0, 0], sizes = [1, 128], strides = [1, 1]} : vector<8x128xf32> to vector<1x128xf32>
    %67 = vector.shape_cast %66 : vector<1x128xf32> to vector<1x128xf32>
    %68 = vector.broadcast %67 : vector<1x128xf32> to vector<6x128xf32>
    %69 = arith.mulf %68, %6 : vector<6x128xf32>
    %70 = vector.extract_strided_slice %60 {offsets = [1, 0], sizes = [1, 128], strides = [1, 1]} : vector<8x128xf32> to vector<1x128xf32>
    %71 = vector.shape_cast %70 : vector<1x128xf32> to vector<1x128xf32>
    %72 = vector.broadcast %71 : vector<1x128xf32> to vector<6x128xf32>
    %73 = arith.mulf %72, %9 : vector<6x128xf32>
    %74 = arith.addf %69, %73 : vector<6x128xf32>
    %75 = arith.addf %65, %74 : vector<6x128xf32>
    %cst = arith.constant 0.000000e+00 : f32
    %76 = vector.broadcast %cst : f32 to vector<6x128xf32>
    %77 = arith.maximumf %75, %76 : vector<6x128xf32>
    %78 = vector.extract_strided_slice %77 {offsets = [0, 0], sizes = [1, 128], strides = [1, 1]} : vector<6x128xf32> to vector<1x128xf32>
    %79 = vector.shape_cast %78 : vector<1x128xf32> to vector<1x128xf32>
    %80 = vector.broadcast %79 : vector<1x128xf32> to vector<6x128xf32>
    %81 = arith.mulf %80, %15 : vector<6x128xf32>
    %82 = vector.extract_strided_slice %77 {offsets = [1, 0], sizes = [1, 128], strides = [1, 1]} : vector<6x128xf32> to vector<1x128xf32>
    %83 = vector.shape_cast %82 : vector<1x128xf32> to vector<1x128xf32>
    %84 = vector.broadcast %83 : vector<1x128xf32> to vector<6x128xf32>
    %85 = arith.mulf %84, %18 : vector<6x128xf32>
    %86 = vector.extract_strided_slice %77 {offsets = [2, 0], sizes = [1, 128], strides = [1, 1]} : vector<6x128xf32> to vector<1x128xf32>
    %87 = vector.shape_cast %86 : vector<1x128xf32> to vector<1x128xf32>
    %88 = vector.broadcast %87 : vector<1x128xf32> to vector<6x128xf32>
    %89 = arith.mulf %88, %21 : vector<6x128xf32>
    %90 = vector.extract_strided_slice %77 {offsets = [3, 0], sizes = [1, 128], strides = [1, 1]} : vector<6x128xf32> to vector<1x128xf32>
    %91 = vector.shape_cast %90 : vector<1x128xf32> to vector<1x128xf32>
    %92 = vector.broadcast %91 : vector<1x128xf32> to vector<6x128xf32>
    %93 = arith.mulf %92, %24 : vector<6x128xf32>
    %94 = vector.extract_strided_slice %77 {offsets = [4, 0], sizes = [1, 128], strides = [1, 1]} : vector<6x128xf32> to vector<1x128xf32>
    %95 = vector.shape_cast %94 : vector<1x128xf32> to vector<1x128xf32>
    %96 = vector.broadcast %95 : vector<1x128xf32> to vector<6x128xf32>
    %97 = arith.mulf %96, %27 : vector<6x128xf32>
    %98 = vector.extract_strided_slice %77 {offsets = [5, 0], sizes = [1, 128], strides = [1, 1]} : vector<6x128xf32> to vector<1x128xf32>
    %99 = vector.shape_cast %98 : vector<1x128xf32> to vector<1x128xf32>
    %100 = vector.broadcast %99 : vector<1x128xf32> to vector<6x128xf32>
    %101 = arith.mulf %100, %30 : vector<6x128xf32>
    %102 = arith.addf %81, %85 : vector<6x128xf32>
    %103 = arith.addf %89, %93 : vector<6x128xf32>
    %104 = arith.addf %102, %103 : vector<6x128xf32>
    %105 = arith.addf %97, %101 : vector<6x128xf32>
    %106 = arith.addf %105, %33 : vector<6x128xf32>
    %107 = arith.addf %104, %106 : vector<6x128xf32>
    %cst_6 = arith.constant 0.000000e+00 : f32
    %108 = vector.broadcast %cst_6 : f32 to vector<6x128xf32>
    %109 = arith.maximumf %107, %108 : vector<6x128xf32>
    %110 = vector.extract_strided_slice %109 {offsets = [0, 0], sizes = [1, 128], strides = [1, 1]} : vector<6x128xf32> to vector<1x128xf32>
    %111 = vector.shape_cast %110 : vector<1x128xf32> to vector<1x128xf32>
    %112 = vector.broadcast %111 : vector<1x128xf32> to vector<3x128xf32>
    %113 = arith.mulf %112, %36 : vector<3x128xf32>
    %114 = vector.extract_strided_slice %109 {offsets = [1, 0], sizes = [1, 128], strides = [1, 1]} : vector<6x128xf32> to vector<1x128xf32>
    %115 = vector.shape_cast %114 : vector<1x128xf32> to vector<1x128xf32>
    %116 = vector.broadcast %115 : vector<1x128xf32> to vector<3x128xf32>
    %117 = arith.mulf %116, %39 : vector<3x128xf32>
    %118 = vector.extract_strided_slice %109 {offsets = [2, 0], sizes = [1, 128], strides = [1, 1]} : vector<6x128xf32> to vector<1x128xf32>
    %119 = vector.shape_cast %118 : vector<1x128xf32> to vector<1x128xf32>
    %120 = vector.broadcast %119 : vector<1x128xf32> to vector<3x128xf32>
    %121 = arith.mulf %120, %42 : vector<3x128xf32>
    %122 = vector.extract_strided_slice %109 {offsets = [3, 0], sizes = [1, 128], strides = [1, 1]} : vector<6x128xf32> to vector<1x128xf32>
    %123 = vector.shape_cast %122 : vector<1x128xf32> to vector<1x128xf32>
    %124 = vector.broadcast %123 : vector<1x128xf32> to vector<3x128xf32>
    %125 = arith.mulf %124, %45 : vector<3x128xf32>
    %126 = vector.extract_strided_slice %109 {offsets = [4, 0], sizes = [1, 128], strides = [1, 1]} : vector<6x128xf32> to vector<1x128xf32>
    %127 = vector.shape_cast %126 : vector<1x128xf32> to vector<1x128xf32>
    %128 = vector.broadcast %127 : vector<1x128xf32> to vector<3x128xf32>
    %129 = arith.mulf %128, %48 : vector<3x128xf32>
    %130 = vector.extract_strided_slice %109 {offsets = [5, 0], sizes = [1, 128], strides = [1, 1]} : vector<6x128xf32> to vector<1x128xf32>
    %131 = vector.shape_cast %130 : vector<1x128xf32> to vector<1x128xf32>
    %132 = vector.broadcast %131 : vector<1x128xf32> to vector<3x128xf32>
    %133 = arith.mulf %132, %51 : vector<3x128xf32>
    %134 = arith.addf %113, %117 : vector<3x128xf32>
    %135 = arith.addf %121, %125 : vector<3x128xf32>
    %136 = arith.addf %134, %135 : vector<3x128xf32>
    %137 = arith.addf %129, %133 : vector<3x128xf32>
    %138 = arith.addf %137, %54 : vector<3x128xf32>
    %139 = arith.addf %136, %138 : vector<3x128xf32>
    %140 = vector.extract_strided_slice %57 {offsets = [0, 0], sizes = [3, 128], strides = [1, 1]} : vector<6x128xf32> to vector<3x128xf32>
    %141 = vector.extract_strided_slice %57 {offsets = [3, 0], sizes = [3, 128], strides = [1, 1]} : vector<6x128xf32> to vector<3x128xf32>
    %cst_7 = arith.constant 2.000000e-02 : f32
    %142 = vector.broadcast %cst_7 : f32 to vector<3x128xf32>
    %143 = arith.mulf %142, %141 : vector<3x128xf32>
    %144 = arith.addf %140, %143 : vector<3x128xf32>
    %145 = arith.addf %141, %139 : vector<3x128xf32>
    %146 = tpu.concatenate %144, %145 in 0 : vector<3x128xf32>, vector<3x128xf32> -> vector<6x128xf32>
    %c1_i32 = arith.constant 1 : i32
    %c0_8 = arith.constant 0 : index
    %c0_9 = arith.constant 0 : index
    %147 = vector.load %arg3[%c0_8, %c0_9] : memref<6x128xf32, #tpu.memory_space<vmem>>, vector<6x128xf32>
    tpu.vector_store %arg3[%c0_8, %c0_9], %146 {strides = array<i32>} : memref<6x128xf32, #tpu.memory_space<vmem>>, vector<6x128xf32>,
    return
  }
  func.func @transform_0(%arg0: i32) -> (i32, i32, i32) {
    %c0_i32 = arith.constant 0 : i32
    %c0_i32_0 = arith.constant 0 : i32
    %c0_i32_1 = arith.constant 0 : i32
    return %c0_i32, %c0_i32_0, %arg0 : i32, i32, i32
  }
  func.func @transform_1(%arg0: i32) -> (i32, i32) {
    %c0_i32 = arith.constant 0 : i32
    %c0_i32_0 = arith.constant 0 : i32
    %c0_i32_1 = arith.constant 0 : i32
    return %c0_i32, %c0_i32_0 : i32, i32
  }
  func.func @transform_2(%arg0: i32) -> (i32, i32) {
    %c0_i32 = arith.constant 0 : i32
    %c0_i32_0 = arith.constant 0 : i32
    return %c0_i32, %arg0 : i32, i32
  }
}

</mosaic_0001>

<bundles_post_ra>
// kernel: tpu_custom_call.1
= control target key start
LH: loop header
LB: loop body
LE: loop exit
PB: predicated region body
PF: predicated region fallthrough
CT: control target
= control target key end

     0   :  { %7 = vsyncpa [#allocation3], 0  ;;  %s388_s0 = inlined_call_operand.hbm [shape: f32[1,8,128], index: 0, kind: input, shape index: {}]   ;;  %s389_s1 = inlined_call_operand.hbm [shape: f32[24,128], index: 1, kind: input, shape index: {}]   ;;  %s390_s2 = inlined_call_operand.hbm [shape: f32[6,128], index: 2, kind: output, shape index: {}]  }
   0x1   :  { %8 = vsyncpa [#allocation6], 0 }
   0x2   :  { %9 = vsyncpa [#allocation4], 0  ;;  %s339_s9 = smov [#allocation2]   ;;  %s340_s11 = smov [#allocation5]  }
   0x3   :  { %s16_s10 = sshll.u32 %s339_s9, 4  ;;  %s25_s12 = sshll.u32 %s340_s11, 4  ;;  %s17_s10 = int_to_ptr.vmem [resolvable:$true] %s16_s10  ;;  %s26_s12 = int_to_ptr.vmem [resolvable:$true] %s25_s12 }
   0x4   :  { %s281_s13 = scalar_lea.vmem %s17_s10, 128  ;;  %p286_p1 = scmp.lt.s32.totalorder %s17_s10, %s17_s10 }
   0x5   :  { %p282_p0 = scmp.ne.s32.totalorder %s17_s10, %s281_s13  ;;  %p287_p2 = scmp.lt.s32.totalorder %s281_s13, %s281_s13 }
   0x7   :  { %p288_p3 = por %p287_p2, %p286_p1 }
   0x9   :  { %p289_p4 = pnand %p288_p3, %p282_p0 }
   0xb   :  { %292 = shalt.err (!%p289_p4)
}
   0xc   :  { %19 = dma.hbm_to_vmem [thread:$0]  %s388_s0, 128, %s17_s10, [#allocation3]  }
   0xd   :  { %s301_s16 = scalar_lea.vmem %s26_s12, 384  ;;  %p306_p6 = scmp.lt.s32.totalorder %s26_s12, %s26_s12 }
   0xe   :  { %p302_p5 = scmp.ne.s32.totalorder %s26_s12, %s301_s16  ;;  %p307_p7 = scmp.lt.s32.totalorder %s301_s16, %s301_s16 }
  0x10   :  { %p308_p8 = por %p307_p7, %p306_p6 }
  0x12   :  { %p309_p9 = pnand %p308_p8, %p302_p5 }
  0x14   :  { %312 = shalt.err (!%p309_p9)
}
  0x15   :  { %s341_s17 = smov 128   ;;  %s342_s18 = smov 8  }
  0x16   :  { %31 = dma.hbm_to_vmem [thread:$0]  %s389_s1, 384, %s26_s12, [#allocation6], %s341_s17, %s341_s17, %s342_s18  }
  0x17   :  { %333 = dma.done.wait [#allocation3], 128  }
  0x18   :  { %334 = vsyncadd [#allocation3], 4294967168 }
  0x19   :  { %335 = dma.done.wait [#allocation6], 384  }
  0x1a   :  { %336 = vsyncadd [#allocation6], 4294966912  ;;  %v343_v0 = vmov 2   ;;  %v344_v1 = vmov 0   ;;  %v38_v2 = vld [vmem:[#allocation5] sm:$0xff]  ;;  %v345_v3 = vmov 3   ;;  %v117_v10 = vlaneseq }
  0x1b   :  { %257 = vset.pattern.permute.xlu1 %v343_v0  ;;  %255 = vset.pattern.permute.xlu0 %v344_v1  ;;  %v346_v4 = vmov 1   ;;  %v39_v5 = vld [vmem:[#allocation5 + $0x8] sm:$0xff]  ;;  %v347_v6 = vmov 6   ;;  %v348_v7 = vmov 4   ;;  %v40_v8 = vld [vmem:[#allocation5 + $0x10] sm:$0xff]  ;;  %v349_v9 = vmov 5  }
  0x1c   :  { %51 = vperm.xlu1 %257, %v38_v2   ;;  %43 = vperm.xlu0 %255, %v38_v2   ;;  %v118_v11 = vshrl.u32 %v117_v10, 7  ;;  %v374_v15 = vld [vmem:[#allocation2] sm:$0xff]  ;;  %s350_s0 = smov [#allocation7]   ;;  %vm224_vm0 = vcmask 1042432  }
  0x1d   :  { %s233_s1 = sshll.u32 %s350_s0, 4  ;;  %s234_s1 = int_to_ptr.vmem [resolvable:$true] %s233_s1 }
  0x1e   :  { %v372_v12 = vsub.s32 4, %v118_v11  ;;  %v130_v13 = vsub.s32 1, %v118_v11  ;;  %v125_v14 = vsub.s32 0, %v118_v11  ;;  %v148_v32 = vsub.s32 2, %v118_v11  ;;  %s313_s21 = scalar_lea.vmem %s234_s1, 128  ;;  %p318_p11 = scmp.lt.s32.totalorder %s234_s1, %s234_s1 }
  0x1f   :  { %v153_v34 = vsub.s32 3, %v118_v11  ;;  %v163_v41 = vsub.s32 5, %v118_v11  ;;  %v209_v11 = vmul.f32 0.02, %v374_v15  ;;  %p314_p10 = scmp.ne.s32.totalorder %s234_s1, %s313_s21  ;;  %p319_p12 = scmp.lt.s32.totalorder %s313_s21, %s313_s21 }
  0x20   :  { %258 = vset.pattern.permute.xlu1 %v345_v3  ;;  %256 = vset.pattern.permute.xlu0 %v346_v4  ;;  %v120_v18 = vrot.slane %v374_v15, %v372_v12  ;;  %v131_v19 = vrot.slane %v374_v15, %v130_v13  ;;  %v126_v20 = vrot.slane %v374_v15, %v125_v14 }
  0x21   :  { %55 = vperm.xlu1 %258, %v38_v2   ;;  %47 = vperm.xlu0 %256, %v38_v2   ;;  %p320_p13 = por %p319_p12, %p318_p11 }
  0x23   :  { %p321_p0 = pnand %p320_p13, %p314_p10 }
  0x25   :  { %259 = vset.pattern.permute.xlu1 %v344_v1  ;;  %64 = vperm.xlu0 %256, %v39_v5  }
  0x26   :  { %60 = vperm.xlu1 %259, %v39_v5  }
  0x29   :  { %261 = vset.pattern.permute.xlu0 %v345_v3 }
  0x2a   :  { %260 = vset.pattern.permute.xlu1 %v343_v0  ;;  %72 = vperm.xlu0 %261, %v39_v5  }
  0x2b   :  { %68 = vperm.xlu1 %260, %v39_v5  }
  0x2e   :  { %264 = vset.pattern.permute.xlu0 %v347_v6 }
  0x2f   :  { %262 = vset.pattern.permute.xlu1 %v348_v7  ;;  %84 = vperm.xlu0 %264, %v39_v5  }
  0x30   :  { %76 = vperm.xlu1 %262, %v39_v5  }
  0x33   :  { %267 = vset.pattern.permute.xlu0 %v343_v0 }
  0x34   :  { %263 = vset.pattern.permute.xlu1 %v349_v9  ;;  %97 = vperm.xlu0 %267, %v40_v8  }
  0x35   :  { %80 = vperm.xlu1 %263, %v39_v5  }
  0x38   :  { %270 = vset.pattern.permute.xlu0 %v349_v9 }
  0x39   :  { %265 = vset.pattern.permute.xlu1 %v344_v1  ;;  %109 = vperm.xlu0 %270, %v40_v8  }
  0x3a   :  { %89 = vperm.xlu1 %265, %v40_v8  }
  0x3d   :  { %272 = vset.pattern.permute.xlu0 %v347_v6 }
  0x3e   :  { %266 = vset.pattern.permute.xlu1 %v346_v4 }
  0x3f   :  { %93 = vperm.xlu1 %266, %v40_v8  }
  0x43   :  { %268 = vset.pattern.permute.xlu1 %v345_v3 }
  0x44   :  { %101 = vperm.xlu1 %268, %v40_v8  }
  0x48   :  { %269 = vset.pattern.permute.xlu1 %v348_v7 }
  0x49   :  { %105 = vperm.xlu1 %269, %v40_v8  }
  0x4d   :  { %271 = vset.pattern.permute.xlu1 %v347_v6 }
  0x4e   :  { %113 = vperm.xlu1 %271, %v40_v8  }
  0x97   :  { %v52_v16 = vpop.permute.xlu1 %51  ;;  %v44_v17 = vpop.permute.xlu0 %43 }
  0x98   :  { %v121_v21 = vmul.f32 %v120_v18, %v44_v17  ;;  %v132_v24 = vmul.f32 %v131_v19, %v52_v16 }
  0x9c   :  { %v56_v22 = vpop.permute.xlu1 %55  ;;  %v48_v23 = vpop.permute.xlu0 %47 }
  0x9d   :  { %v127_v25 = vmul.f32 %v126_v20, %v48_v23  ;;  %v122_v27 = vadd.f32 %v121_v21, %v56_v22 }
  0x9f   :  { %v133_v26 = vadd.f32 %v132_v24, %v127_v25 }
  0xa0   :  { %v65_v30 = vpop.permute.xlu0 %64 }
  0xa1   :  { %v61_v28 = vpop.permute.xlu1 %60  ;;  %v134_v29 = vadd.f32 %v133_v26, %v122_v27 }
  0xa3   :  { %v135_v31 = vmax.f32 %v134_v29, 0.0 }
  0xa5   :  { %v139_v35 = vrot.slane %v135_v31, %v125_v14  ;;  %v144_v36 = vrot.slane %v135_v31, %v130_v13  ;;  %v149_v37 = vrot.slane %v135_v31, %v148_v32  ;;  %v154_v38 = vrot.slane %v135_v31, %v153_v34  ;;  %v73_v39 = vpop.permute.xlu0 %72 }
  0xa6   :  { %v69_v33 = vpop.permute.xlu1 %68  ;;  %v159_v46 = vrot.slane %v135_v31, %v372_v12  ;;  %v164_v47 = vrot.slane %v135_v31, %v163_v41 }
  0xa7   :  { %v140_v42 = vmul.f32 %v139_v35, %v61_v28  ;;  %v145_v43 = vmul.f32 %v144_v36, %v65_v30  ;;  %v150_v44 = vmul.f32 %v149_v37, %v69_v33  ;;  %v155_v45 = vmul.f32 %v154_v38, %v73_v39 }
  0xa9   :  { %v166_v51 = vadd.f32 %v145_v43, %v140_v42  ;;  %v167_v52 = vadd.f32 %v155_v45, %v150_v44 }
  0xaa   :  { %v85_v53 = vpop.permute.xlu0 %84 }
  0xab   :  { %v77_v40 = vpop.permute.xlu1 %76  ;;  %v168_v57 = vadd.f32 %v167_v52, %v166_v51 }
  0xac   :  { %v160_v49 = vmul.f32 %v159_v46, %v77_v40 }
  0xaf   :  { %v98_v61 = vpop.permute.xlu0 %97 }
  0xb0   :  { %v81_v48 = vpop.permute.xlu1 %80 }
  0xb1   :  { %v165_v50 = vmul.f32 %v164_v47, %v81_v48 }
  0xb3   :  { %v169_v54 = vadd.f32 %v165_v50, %v160_v49 }
  0xb4   :  { %v110_v4 = vpop.permute.xlu0 %109 }
  0xb5   :  { %v170_v55 = vadd.f32 %v169_v54, %v85_v53  ;;  %v90_v56 = vpop.permute.xlu1 %89 }
  0xb7   :  { %v171_v58 = vadd.f32 %v170_v55, %v168_v57 }
  0xb9   :  { %v172_v60 = vmax.f32 %v171_v58, 0.0 }
  0xba   :  { %v94_v59 = vpop.permute.xlu1 %93 }
  0xbb   :  { %v176_v63 = vrot.slane %v172_v60, %v125_v14  ;;  %v186_v0 = vrot.slane %v172_v60, %v148_v32  ;;  %v181_v1 = vrot.slane %v172_v60, %v130_v13  ;;  %v191_v2 = vrot.slane %v172_v60, %v153_v34 }
  0xbc   :  { %v201_v3 = vrot.slane %v172_v60, %v163_v41  ;;  %v196_v6 = vrot.slane %v172_v60, %v372_v12  ;;  %v211_v14 = vrot.slane %v209_v11, 3 }
  0xbd   :  { %v177_v7 = vmul.f32 %v176_v63, %v90_v56  ;;  %v187_v8 = vmul.f32 %v186_v0, %v98_v61  ;;  %v182_v9 = vmul.f32 %v181_v1, %v94_v59 }
  0xbe   :  { %v202_v16 = vmul.f32 %v201_v3, %v110_v4  ;;  %v213_v24 = vadd.f32 %v211_v14, %v374_v15 }
  0xbf   :  { %v102_v62 = vpop.permute.xlu1 %101  ;;  %v203_v20 = vadd.f32 %v182_v9, %v177_v7 }
  0xc0   :  { %v192_v5 = vmul.f32 %v191_v2, %v102_v62  ;;  %v219_v26 = vrot.slane %v213_v24, 2 }
  0xc2   :  { %v204_v18 = vadd.f32 %v192_v5, %v187_v8 }
  0xc4   :  { %v106_v10 = vpop.permute.xlu1 %105  ;;  %v205_v13 = vadd.f32 %v204_v18, %v203_v20 }
  0xc5   :  { %v197_v17 = vmul.f32 %v196_v6, %v106_v10 }
  0xc7   :  { %v206_v19 = vadd.f32 %v202_v16, %v197_v17 }
  0xc9   :  { %v114_v21 = vpop.permute.xlu1 %113 }
  0xca   :  { %v207_v22 = vadd.f32 %v206_v19, %v114_v21 }
  0xcc   :  { %v208_v23 = vadd.f32 %v207_v22, %v205_v13 }
  0xce   :  { %v215_v25 = vrot.slane %v208_v23, 3 }
  0xd0   :  { %v217_v12 = vadd.f32 %v215_v25, %v374_v15 }
  0xd2   :  { %v222_v27 = vrot.slane %v217_v12, 2 }
  0xd4   :  { %v225_v28 = vsel %vm224_vm0, %v219_v26, %v222_v27 }
  0xd5   :  { %226 = vst [vmem:[#allocation7] sm:$0x3f] %v225_v28 }
  0xd6   :  { %324 = shalt.err (!%p321_p0)
}
  0xd7   :  { %236 = dma.vmem_to_hbm [thread:$0]  %s234_s1, 128, %s390_s2, [#allocation4]  }
  0xd8   :  { %337 = dma.done.wait [#allocation4], 128  }
  0xd9   :  { %338 = vsyncadd [#allocation4], 4294967168 }
  0xda   :  { %240 = vsyncpa [#allocation3], 1 }
  0xdb   :  { %241 = vsyncpa [#allocation6], 1 }
  0xdc   :  { %242 = vsyncpa [#allocation4], 1 }

</bundles_post_ra>
